<compile_context>
chip_gen: v7x
topology: tpu7x:2x2x1
jax: 0.10.0
libtpu: 0.0.40
codegen_flags: <defaults>
</compile_context>

<pallas_src>
import jax
import jax.numpy as jnp
from jax.experimental import pallas as pl
from jax.experimental.pallas import tpu as pltpu

C = 16  # channel count fixed by the module (Conv2d(16, 16, 1))


def _round_up(x, m):
    return ((x + m - 1) // m) * m


def _fused_kernel(x_ref, x3_ref, w_ref, b_ref, o_ref):
    # x_ref / x3_ref / o_ref: (1, 16, tile_s)   w_ref: (3, 16, 16)   b_ref: (3, 16, 1)
    x = x_ref[0]          # (16, tile_s)
    x3 = x3_ref[0]        # (16, tile_s)

    w1, w2, w3 = w_ref[0], w_ref[1], w_ref[2]   # (16, 16) each, (Cout, Cin)
    b1, b2, b3 = b_ref[0], b_ref[1], b_ref[2]   # (16, 1) each

    # conv (1x1): out[o, s] = sum_c w[o, c] * x[c, s] + b[o]
    v1 = jnp.dot(w1, x, preferred_element_type=jnp.float32) + b1
    v3 = jnp.maximum(v1 + x3, 0.0)

    v4 = jnp.dot(w2, v3, preferred_element_type=jnp.float32) + b2
    v6 = jnp.maximum(v4 + x3, 0.0)

    v7 = jnp.dot(w3, v6, preferred_element_type=jnp.float32) + b3
    o_ref[0] = jnp.maximum(v7 + v7, 0.0).astype(o_ref.dtype)


def fused_forward(x1, x3, params, *, tile_s=2048):
    """x1, x3: (N, 16, H, W) float32 NCHW.  Returns (N, 16, H, W)."""
    (w1, b1), (w2, b2), (w3, b3) = params
    N, Cin, H, W = x1.shape
    assert Cin == C
    S = H * W

    # Effective spatial tile: multiple of 128 (lane-dense), no bigger than needed.
    tile = min(_round_up(tile_s, 128), _round_up(S, 128))
    S_pad = _round_up(S, tile)

    # NCHW -> (N, C, S); merging contiguous trailing dims is free.
    x1r = x1.reshape(N, C, S)
    x3r = x3.reshape(N, C, S)
    if S_pad != S:
        pad = ((0, 0), (0, 0), (0, S_pad - S))
        x1r = jnp.pad(x1r, pad)
        x3r = jnp.pad(x3r, pad)

    # Pack weights (Cout, Cin, 1, 1) -> one (3, 16, 16); biases -> (3, 16, 1).
    w_all = jnp.stack([w1.reshape(C, C), w2.reshape(C, C), w3.reshape(C, C)])
    b_all = jnp.stack([b1.reshape(C, 1), b2.reshape(C, 1), b3.reshape(C, 1)])

    x_spec = pl.BlockSpec((1, C, tile), lambda n, s: (n, 0, s))
    w_spec = pl.BlockSpec((3, C, C), lambda n, s: (0, 0, 0))
    b_spec = pl.BlockSpec((3, C, 1), lambda n, s: (0, 0, 0))

    out = pl.pallas_call(
        _fused_kernel,
        out_shape=jax.ShapeDtypeStruct((N, C, S_pad), jnp.float32),
        grid_spec=pltpu.PrefetchScalarGridSpec(
            num_scalar_prefetch=0,
            grid=(N, S_pad // tile),
            in_specs=[x_spec, x_spec, w_spec, b_spec],
            out_specs=x_spec,
        ),
        compiler_params=pltpu.CompilerParams(
            dimension_semantics=("parallel", "parallel")),
    )(x1r, x3r, w_all, b_all)

    if S_pad != S:
        out = out[:, :, :S]
    return out.reshape(N, C, H, W)


def _reference(x1, x3, params):
    (w1, b1), (w2, b2), (w3, b3) = params

    def conv1x1(x, w, b):
        # x: NCHW, w: (Cout, Cin, 1, 1)
        y = jnp.einsum('nchw,oc->nohw', x, w.reshape(C, C))
        return y + b.reshape(1, C, 1, 1)

    v3 = jax.nn.relu(conv1x1(x1, w1, b1) + x3)
    v6 = jax.nn.relu(conv1x1(v3, w2, b2) + x3)
    v7 = conv1x1(v6, w3, b3)
    return jax.nn.relu(v7 + v7)


def _init_params(key):
    # Conv2d(16,16,1): weight (16,16,1,1), bias (16,), uniform(-k, k), k=1/sqrt(16)
    k = 1.0 / jnp.sqrt(jnp.float32(C))
    params = []
    for _ in range(3):
        kw, kb, key = jax.random.split(key, 3)
        w = jax.random.uniform(kw, (C, C, 1, 1), jnp.float32, -k, k)
        b = jax.random.uniform(kb, (C,), jnp.float32, -k, k)
        params.append((w, b))
    return params


if __name__ == "__main__":
    key = jax.random.PRNGKey(0)
    kx, k3, kp = jax.random.split(key, 3)

    N, H, W = 2, 8, 8
    x1 = jax.random.normal(kx, (N, C, H, W), jnp.float32)
    x3 = jax.random.normal(k3, (N, C, H, W), jnp.float32)
    params = _init_params(kp)

    out = fused_forward(x1, x3, params)
    out = jax.block_until_ready(out)

    ref = _reference(x1, x3, params)
    assert out.shape == (N, C, H, W)
    assert jnp.allclose(out, ref, atol=1e-5, rtol=1e-5), "mismatch vs reference"

    print("KERNEL_OK")
</pallas_src>

<mosaic_0001>
module attributes {stable_mosaic.version = 11 : i64} {
  func.func @_fused_kernel(%arg0: i32, %arg1: i32, %arg2: memref<1x16x128xf32, #tpu.memory_space<vmem>>, %arg3: memref<1x16x128xf32, #tpu.memory_space<vmem>>, %arg4: memref<3x16x16xf32, #tpu.memory_space<vmem>>, %arg5: memref<3x16x1xf32, #tpu.memory_space<vmem>>, %arg6: memref<1x16x128xf32, #tpu.memory_space<vmem>>) attributes {dimension_semantics = [#tpu.dimension_semantics<parallel>, #tpu.dimension_semantics<parallel>], iteration_bounds = array<i64: 2, 1>, scalar_prefetch = 0 : i64, scratch_operands = 0 : i64, tpu.core_type = #tpu.core_type<tc>, window_params = [{transform_indices = @transform_0, window_bounds = array<i64: 1, 16, 128>}, {transform_indices = @transform_1, window_bounds = array<i64: 1, 16, 128>}, {pipeline_mode = #tpu.pipeline_mode<synchronous>, transform_indices = @transform_2, window_bounds = array<i64: 3, 16, 16>}, {pipeline_mode = #tpu.pipeline_mode<synchronous>, transform_indices = @transform_3, window_bounds = array<i64: 3, 16, 1>}, {transform_indices = @transform_4, window_bounds = array<i64: 1, 16, 128>}]} {
    %c0 = arith.constant 0 : index
    %c0_0 = arith.constant 0 : index
    %c0_1 = arith.constant 0 : index
    %0 = vector.load %arg2[%c0, %c0_0, %c0_1] : memref<1x16x128xf32, #tpu.memory_space<vmem>>, vector<1x16x128xf32>
    %1 = vector.shape_cast %0 : vector<1x16x128xf32> to vector<16x128xf32>
    %c0_2 = arith.constant 0 : index
    %c0_3 = arith.constant 0 : index
    %c0_4 = arith.constant 0 : index
    %2 = vector.load %arg3[%c0_2, %c0_3, %c0_4] : memref<1x16x128xf32, #tpu.memory_space<vmem>>, vector<1x16x128xf32>
    %3 = vector.shape_cast %2 : vector<1x16x128xf32> to vector<16x128xf32>
    %c0_5 = arith.constant 0 : index
    %c0_6 = arith.constant 0 : index
    %c0_7 = arith.constant 0 : index
    %4 = vector.load %arg4[%c0_5, %c0_6, %c0_7] : memref<3x16x16xf32, #tpu.memory_space<vmem>>, vector<1x16x16xf32>
    %5 = vector.shape_cast %4 : vector<1x16x16xf32> to vector<16x16xf32>
    %c1 = arith.constant 1 : index
    %c0_8 = arith.constant 0 : index
    %c0_9 = arith.constant 0 : index
    %6 = vector.load %arg4[%c1, %c0_8, %c0_9] : memref<3x16x16xf32, #tpu.memory_space<vmem>>, vector<1x16x16xf32>
    %7 = vector.shape_cast %6 : vector<1x16x16xf32> to vector<16x16xf32>
    %c2 = arith.constant 2 : index
    %c0_10 = arith.constant 0 : index
    %c0_11 = arith.constant 0 : index
    %8 = vector.load %arg4[%c2, %c0_10, %c0_11] : memref<3x16x16xf32, #tpu.memory_space<vmem>>, vector<1x16x16xf32>
    %9 = vector.shape_cast %8 : vector<1x16x16xf32> to vector<16x16xf32>
    %c0_12 = arith.constant 0 : index
    %c0_13 = arith.constant 0 : index
    %c0_14 = arith.constant 0 : index
    %10 = vector.load %arg5[%c0_12, %c0_13, %c0_14] : memref<3x16x1xf32, #tpu.memory_space<vmem>>, vector<1x16x1xf32>
    %11 = vector.shape_cast %10 : vector<1x16x1xf32> to vector<16x1xf32>
    %c1_15 = arith.constant 1 : index
    %c0_16 = arith.constant 0 : index
    %c0_17 = arith.constant 0 : index
    %12 = vector.load %arg5[%c1_15, %c0_16, %c0_17] : memref<3x16x1xf32, #tpu.memory_space<vmem>>, vector<1x16x1xf32>
    %13 = vector.shape_cast %12 : vector<1x16x1xf32> to vector<16x1xf32>
    %c2_18 = arith.constant 2 : index
    %c0_19 = arith.constant 0 : index
    %c0_20 = arith.constant 0 : index
    %14 = vector.load %arg5[%c2_18, %c0_19, %c0_20] : memref<3x16x1xf32, #tpu.memory_space<vmem>>, vector<1x16x1xf32>
    %15 = vector.shape_cast %14 : vector<1x16x1xf32> to vector<16x1xf32>
    %cst = arith.constant dense<0.000000e+00> : vector<16x128xf32>
    %16 = tpu.matmul %5, %1, %cst {dimension_numbers = #tpu.dot_dimension_numbers<[1], [0], [0], [1], [0, 0, 1, 1], [], []>} : vector<16x16xf32>, vector<16x128xf32>, vector<16x128xf32> -> vector<16x128xf32>
    %17 = vector.broadcast %11 : vector<16x1xf32> to vector<16x128xf32>
    %18 = arith.addf %16, %17 : vector<16x128xf32>
    %19 = arith.addf %18, %3 : vector<16x128xf32>
    %cst_21 = arith.constant 0.000000e+00 : f32
    %20 = vector.broadcast %cst_21 : f32 to vector<16x128xf32>
    %21 = arith.maximumf %19, %20 : vector<16x128xf32>
    %cst_22 = arith.constant dense<0.000000e+00> : vector<16x128xf32>
    %22 = tpu.matmul %7, %21, %cst_22 {dimension_numbers = #tpu.dot_dimension_numbers<[1], [0], [0], [1], [0, 0, 1, 1], [], []>} : vector<16x16xf32>, vector<16x128xf32>, vector<16x128xf32> -> vector<16x128xf32>
    %23 = vector.broadcast %13 : vector<16x1xf32> to vector<16x128xf32>
    %24 = arith.addf %22, %23 : vector<16x128xf32>
    %25 = arith.addf %24, %3 : vector<16x128xf32>
    %cst_23 = arith.constant 0.000000e+00 : f32
    %26 = vector.broadcast %cst_23 : f32 to vector<16x128xf32>
    %27 = arith.maximumf %25, %26 : vector<16x128xf32>
    %cst_24 = arith.constant dense<0.000000e+00> : vector<16x128xf32>
    %28 = tpu.matmul %9, %27, %cst_24 {dimension_numbers = #tpu.dot_dimension_numbers<[1], [0], [0], [1], [0, 0, 1, 1], [], []>} : vector<16x16xf32>, vector<16x128xf32>, vector<16x128xf32> -> vector<16x128xf32>
    %29 = vector.broadcast %15 : vector<16x1xf32> to vector<16x128xf32>
    %30 = arith.addf %28, %29 : vector<16x128xf32>
    %31 = arith.addf %30, %30 : vector<16x128xf32>
    %cst_25 = arith.constant 0.000000e+00 : f32
    %32 = vector.broadcast %cst_25 : f32 to vector<16x128xf32>
    %33 = arith.maximumf %31, %32 : vector<16x128xf32>
    %c0_26 = arith.constant 0 : index
    %c0_27 = arith.constant 0 : index
    %c0_28 = arith.constant 0 : index
    %34 = vector.load %arg6[%c0_26, %c0_27, %c0_28] : memref<1x16x128xf32, #tpu.memory_space<vmem>>, vector<1x16x128xf32>
    %35 = vector.shape_cast %34 : vector<1x16x128xf32> to vector<16x128xf32>
    %36 = vector.shape_cast %33 : vector<16x128xf32> to vector<1x16x128xf32>
    tpu.vector_store %arg6[%c0_26, %c0_27, %c0_28], %36 {strides = array<i32>} : memref<1x16x128xf32, #tpu.memory_space<vmem>>, vector<1x16x128xf32>,
    return
  }
  func.func @transform_0(%arg0: i32, %arg1: i32) -> (i32, i32, i32) {
    %c0_i32 = arith.constant 0 : i32
    %c0_i32_0 = arith.constant 0 : i32
    return %arg0, %c0_i32, %arg1 : i32, i32, i32
  }
  func.func @transform_1(%arg0: i32, %arg1: i32) -> (i32, i32, i32) {
    %c0_i32 = arith.constant 0 : i32
    %c0_i32_0 = arith.constant 0 : i32
    return %arg0, %c0_i32, %arg1 : i32, i32, i32
  }
  func.func @transform_2(%arg0: i32, %arg1: i32) -> (i32, i32, i32) {
    %c0_i32 = arith.constant 0 : i32
    %c0_i32_0 = arith.constant 0 : i32
    %c0_i32_1 = arith.constant 0 : i32
    %c0_i32_2 = arith.constant 0 : i32
    return %c0_i32, %c0_i32_0, %c0_i32_1 : i32, i32, i32
  }
  func.func @transform_3(%arg0: i32, %arg1: i32) -> (i32, i32, i32) {
    %c0_i32 = arith.constant 0 : i32
    %c0_i32_0 = arith.constant 0 : i32
    %c0_i32_1 = arith.constant 0 : i32
    %c0_i32_2 = arith.constant 0 : i32
    return %c0_i32, %c0_i32_0, %c0_i32_1 : i32, i32, i32
  }
  func.func @transform_4(%arg0: i32, %arg1: i32) -> (i32, i32, i32) {
    %c0_i32 = arith.constant 0 : i32
    %c0_i32_0 = arith.constant 0 : i32
    return %arg0, %c0_i32, %arg1 : i32, i32, i32
  }
}

</mosaic_0001>

<bundles_post_ra>
// kernel: tpu_custom_call.1
= control target key start
LH: loop header
LB: loop body
LE: loop exit
PB: predicated region body
PF: predicated region fallthrough
CT: control target
= control target key end

     0   :  { %9 = vsyncpa [#allocation3], 0  ;;  %s1332_s0 = inlined_call_operand.hbm [shape: f32[2,16,128], index: 0, kind: input, shape index: {}]   ;;  %s1333_s1 = inlined_call_operand.hbm [shape: f32[2,16,128], index: 1, kind: input, shape index: {}]   ;;  %s1334_s2 = inlined_call_operand.vmem [shape: f32[3,16,16], index: 2, kind: input, shape index: {}]   ;;  %s1335_s3 = inlined_call_operand.vmem [shape: f32[3,16,1], index: 3, kind: input, shape index: {}]   ;;  %s1336_s4 = inlined_call_operand.hbm [shape: f32[2,16,128], index: 4, kind: output, shape index: {}]  }
   0x1   :  { %11 = vsyncpa [#allocation3 + $0x1], 0 }
   0x2   :  { %12 = vsyncpa [#allocation6], 0 }
   0x3   :  { %14 = vsyncpa [#allocation6 + $0x1], 0 }
   0x4   :  { %15 = vsyncpa [#allocation4], 0 }
   0x5   :  { %17 = vsyncpa [#allocation4 + $0x1], 0  ;;  %s1045_s15 = smov 0   ;;  %s1047_s16 = smov 0  }
   0x6   :  { %s1049_s17 = smov 0   ;;  %s1051_s18 = smov 0  }
   0x7   :  { %s1053_s19 = smov 0   ;;  %s1055_s20 = smov 0  }
   0x8 LB: > { %s709_s21 = sadd.s32 4294967295, %s1010_s20   ;;  %s710_s22 = sadd.s32 4294967294, %s1010_s20   ;;  %s1010_s20 = sphi %s1055_s20, %s23_s20   ;;  %s1006_s19 = sphi %s1053_s19, %s1356_s19   ;;  %s1002_s18 = sphi %s1051_s18, %s1355_s18   ;;  %s998_s17 = sphi %s1049_s17, %s1354_s17   ;;  %s994_s16 = sphi %s1047_s16, %s1353_s16   ;;  %s990_s15 = sphi %s1045_s15, %s1352_s15  }
   0x9   : > { %s35_s23 = sadd.s32 1, %s1006_s19  ;;  %s44_s24 = sadd.s32 1, %s998_s17 }
   0xa   : > { %p37_p0 = scmp.ge.s32.totalorder %s35_s23, 2  ;;  %p51_p1 = scmp.ne.s32.totalorder %s998_s17, %s994_s16 }
   0xb   : > { %p52_p2 = scmp.eq.s32.totalorder %s1010_s20, 0  ;;  %p57_p3 = scmp.ne.s32.totalorder %s994_s16, %s990_s15 }
   0xc   : > { %s1358_s23 = smov (%p37_p0, %s35_s23), 0  ;;  %p58_p5 = scmp.eq.s32.totalorder %s709_s21, 0 }
   0xd   : > { %p1086_p4 = por %p52_p2, %p51_p1  ;;  %s39_s26 = ssub.s32 %s1006_s19, %s1358_s23 }
   0xe   : > { %p153_p6 = scmp.eq.s32.totalorder %s709_s21, 1  ;;  %p42_p7 = scmp.eq.s32.totalorder %s39_s26, 0 }
   0xf   : > { %p1092_p8 = por %p58_p5, %p57_p3  ;;  %p159_p10 = scmp.eq.s32.totalorder %s710_s22, 1 }
  0x10   : > { %p1096_p9 = por %p153_p6, %p51_p1  ;;  %p807_p13 = scmp.lt.s32.totalorder %s1010_s20, 2 }
  0x11   : > { %s1341_s27 = scalar_select %p1092_p8, 1, 0 }
  0x12   : > { %s1342_s28 = scalar_select %p1096_p9, 1, 0 }
  0x13   : > { %s1101_s29 = scalar_select %p42_p7, %s998_s17, %s44_s24  }
  0x14   : > { %p1103_p11 = por %p159_p10, %p57_p3  ;;  %s1110_s5 = sand.u32 1, %s998_s17  }
  0x15   : > { %s713_s6 = sshll.u32 %s1110_s5, 4  ;;  %s742_s7 = sshll.u32 %s1006_s19, 8 }
  0x16   : > { %s1343_s30 = scalar_select %p1103_p11, 1, 0 }
  0x17   : > { %s1119_s10 = scalar_lea.hbm %s1332_s0, %s742_s7  ;;  %s189_s11 = scalar_lea.vmem [#allocation2], %s713_s6 }
  0x18   : > { %s197_s12 = sshll.u32 %s189_s11, 4  ;;  %p1127_p0 = pnand %p807_p13, %p1086_p4  ;;  %s1123_s12 = int_to_ptr.vmem [resolvable:$true] %s197_s12 }
  0x19   : > { %s186_s14 = scalar_lea.sflag [#allocation3], %s1110_s5  ;;  %s864_s21 = scalar_lea.hbm %s1119_s10, 256 }
  0x1a   : > { %p865_p2 = scmp.ne.s32.totalorder %s1119_s10, %s864_s21  ;;  %p866_p3 = pneg %p1127_p0 }
  0x1b   : > { %s869_s25 = scalar_lea.hbm %s1332_s0, 512  ;;  %p870_p4 = scmp.lt.u32.totalorder %s1119_s10, %s1332_s0 }
  0x1c   : > { %p867_p5 = pnand %p866_p3, %p865_p2  ;;  %p871_p7 = scmp.lt.u32.totalorder %s869_s25, %s864_s21 }
  0x1d   : > { %p873_p13 = scmp.lt.u32.totalorder %s864_s21, %s1119_s10 }
  0x1e   : > { %p868_p6 = pneg %p867_p5  ;;  %p872_p10 = por %p871_p7, %p870_p4 }
  0x20   : > { %p874_p12 = por %p873_p13, %p872_p10 }
  0x22   : > { %p875_p1 = pnand %p874_p12, %p868_p6 }
  0x24   : > { %878 = shalt.err (!%p875_p1)
}
  0x25   : > { %s879_s9 = scalar_lea.vmem %s1123_s12, 256  ;;  %s1012_s11 = smov [#allocation2]  }
  0x26   : > { %p880_p2 = scmp.ne.s32.totalorder %s1123_s12, %s879_s9  ;;  %s884_s22 = sshll.u32 %s1012_s11, 4  ;;  %s885_s22 = int_to_ptr.vmem [resolvable:$false] %s884_s22 }
  0x27   : > { %s886_s24 = scalar_lea.vmem %s885_s22, 512  ;;  %p887_p9 = scmp.lt.s32.totalorder %s1123_s12, %s885_s22 }
  0x28   : > { %p882_p5 = pnand %p880_p2, %p866_p3  ;;  %p888_p4 = scmp.lt.s32.totalorder %s886_s24, %s879_s9 }
  0x2a   : > { %p883_p11 = pneg %p882_p5  ;;  %p889_p7 = por %p888_p4, %p887_p9 }
  0x2c   : > { %p890_p10 = pnand %p889_p7, %p883_p11 }
  0x2e   : > { %893 = shalt.err (!%p890_p10)
}
  0x2f   : > { %s1338_s21 = smov 128   ;;  %s1014_s25 = smov 8  }
  0x30   : > { %799 = dma.hbm_to_vmem [thread:$0]  (!%p1127_p0), %s1119_s10, 256, %s1123_s12, %s186_s14, %s1338_s21, %s1338_s21, %s1014_s25  }
  0x31   : > { %p227_p9 = scmp.lt.s32.totalorder %s1010_s20, 3  ;;  %s1169_s9 = scalar_lea.hbm %s1333_s1, %s742_s7 }
  0x32   : > { %p1345_p11 = scmp.ge.s32.totalorder %s1010_s20, 1  ;;  %s211_s22 = scalar_lea.vmem [#allocation5], %s713_s6 }
  0x33   : > { %s219_s24 = sshll.u32 %s211_s22, 4  ;;  %s208_s10 = scalar_lea.sflag [#allocation6], %s1110_s5  ;;  %s1179_s24 = int_to_ptr.vmem [resolvable:$true] %s219_s24 }
  0x34   : > { %p1173_p12 = pnand %p1345_p11, %p227_p9  ;;  %s894_s12 = scalar_lea.hbm %s1169_s9, 256 }
  0x35   : > { %p895_p1 = scmp.ne.s32.totalorder %s1169_s9, %s894_s12  ;;  %s899_s26 = scalar_lea.hbm %s1333_s1, 512 }
  0x36   : > { %p900_p2 = scmp.lt.u32.totalorder %s1169_s9, %s1333_s1  ;;  %p901_p5 = scmp.lt.u32.totalorder %s899_s26, %s894_s12 }
  0x37   : > { %p897_p6 = pnand %p895_p1, %p866_p3  ;;  %p903_p7 = scmp.lt.u32.totalorder %s894_s12, %s1169_s9 }
  0x38   : > { %p902_p4 = por %p901_p5, %p900_p2 }
  0x39   : > { %p898_p13 = pneg %p897_p6 }
  0x3a   : > { %p904_p10 = por %p903_p7, %p902_p4 }
  0x3c   : > { %p905_p9 = pnand %p904_p10, %p898_p13 }
  0x3e   : > { %908 = shalt.err (!%p905_p9)
}
  0x3f   : > { %s909_s6 = scalar_lea.vmem %s1179_s24, 256  ;;  %s1015_s22 = smov [#allocation5]  }
  0x40   : > { %p910_p11 = scmp.ne.s32.totalorder %s1179_s24, %s909_s6  ;;  %s914_s7 = sshll.u32 %s1015_s22, 4  ;;  %s915_s7 = int_to_ptr.vmem [resolvable:$false] %s914_s7 }
  0x41   : > { %s916_s21 = scalar_lea.vmem %s915_s7, 512  ;;  %p917_p8 = scmp.lt.s32.totalorder %s1179_s24, %s915_s7 }
  0x42   : > { %p912_p1 = pnand %p910_p11, %p866_p3  ;;  %p918_p2 = scmp.lt.s32.totalorder %s916_s21, %s909_s6 }
  0x44   : > { %p913_p6 = pneg %p912_p1  ;;  %p919_p5 = por %p918_p2, %p917_p8 }
  0x46   : > { %p920_p4 = pnand %p919_p5, %p913_p6 }
  0x48   : > { %923 = shalt.err (!%p920_p4)
}
  0x49   : > { %s1347_s12 = smov 128   ;;  %231 = sbr.rel (%p1173_p12) target bundleno = 774 (0x306), region = 36 }
  0x4a   : > { %802 = dma.hbm_to_vmem [thread:$0]  (!%p1127_p0), %s1169_s9, 256, %s1179_s24, %s208_s10, %s1347_s12, %s1347_s12, %s1014_s25  }
  0x4b   : > { %s1213_s14 = sand.u32 (!%p1173_p12), 1, %s994_s16   ;;  %p1348_p8 = scmp.ne.s32.totalorder (!%p1173_p12), %s1341_s27, 0 }
  0x4c   : > { %s1216_s26 = sshll.u32 (!%p1173_p12), %s1213_s14, 4  ;;  %s234_s13 = scalar_lea.sflag (!%p1173_p12), [#allocation3], %s1213_s14 }
  0x4d   : > { %s237_s8 = scalar_lea.vmem (!%p1173_p12), [#allocation2], %s1216_s26 }
  0x50   : > { %977 = dma.done.wait (%p1348_p8), %s234_s13, 256  }
  0x51   : > { %979 = vsyncadd (%p1348_p8), %s234_s13, 4294967040  ;;  %s243_s5 = scalar_lea.sflag [#allocation6], %s1213_s14  ;;  %s246_s25 = scalar_lea.vmem [#allocation5], %s1216_s26 }
  0x52   : > { %981 = dma.done.wait (%p1348_p8), %s243_s5, 256  }
  0x53   : > { %983 = vsyncadd (%p1348_p8), %s243_s5, 4294967040  ;;  %v1016_v0 = vmov 0   ;;  %vm306_vm0 = vcmask 130048   ;;  %v276_v1 = vld [vmem:[%s237_s8] sm:$0xff]  ;;  %v277_v2 = vld [vmem:[%s237_s8 + $0x8] sm:$0xff]  ;;  %s275_s13 = scalar_lea.vmem [#allocation7], %s1216_s26 }
  0x54   : > { %862 = vset.pattern.permute.xlu0 %v1016_v0  ;;  %863 = vset.pattern.permute.xlu1 %v1016_v0  ;;  %v280_v3 = vld [vmem:[%s1334_s2] sm:$0xff]  ;;  %v778_v4 = vpack.c.bf16 %v277_v2, %v276_v1  ;;  %v289_v6 = vld [vmem:[%s1335_s3 + $0x8] sm:$0xff]  ;;  %v723_v9 = vld [vmem:[%s1334_s2 + $0x10] sm:$0xff]  ;;  %s599_s8 = sshll.u32 %s275_s13, 4  ;;  %s744_s5 = sshll.u32 %s1002_s18, 8  ;;  %s1278_s8 = int_to_ptr.vmem [resolvable:$true] %s599_s8 }
  0x55   : > { %761 = vmatprep.mubr.msk.f32.mxu0 %vm306_vm0, %v280_v3  ;;  %v288_v5 = vld [vmem:[%s1335_s3] sm:$0xff]  ;;  %v281_v7 = vld [vmem:[%s1334_s2 + $0x8] sm:$0xff]  ;;  %768 = vmatprep.mubr.msk.f32.mxu1 %vm306_vm0, %v723_v9  ;;  %v727_v10 = vld [vmem:[%s1335_s3 + $0x10] sm:$0xff]  ;;  %s1283_s24 = scalar_lea.hbm %s1336_s4, %s744_s5  ;;  %s585_s26 = scalar_lea.sflag [#allocation4], %s1213_s14 }
  0x56   : > { %298 = vperm.xlu0 %862, %v288_v5   ;;  %779 = vmatprep.subr.bf16.mxu0 %v778_v4  ;;  %v729_v8 = vld [vmem:[%s1335_s3 + $0x20] sm:$0xff]  ;;  %v728_v11 = vld [vmem:[%s1335_s3 + $0x18] sm:$0xff]  ;;  %v730_v12 = vld [vmem:[%s1335_s3 + $0x28] sm:$0xff]  ;;  %s924_s10 = scalar_lea.vmem %s1278_s8, 256  ;;  %p1349_p3 = scmp.ne.s32.totalorder %s1342_s28, 0 }
  0x57   : > { %781 = vmatpush3.bf16.msra.mxu0 %v778_v4  ;;  %394 = vperm.xlu1 %863, %v727_v10   ;;  %v279_v15 = vld [vmem:[%s246_s25 + $0x8] sm:$0xff]  ;;  %v278_v18 = vld [vmem:[%s246_s25] sm:$0xff]  ;;  %p925_p0 = scmp.ne.s32.totalorder %s1278_s8, %s924_s10  ;;  %s1017_s18 = smov [#allocation7]  }
  0x58   : > { %v724_v26 = vld [vmem:[%s1334_s2 + $0x18] sm:$0xff]  ;;  %v725_v27 = vld [vmem:[%s1334_s2 + $0x20] sm:$0xff]  ;;  %v726_v39 = vld [vmem:[%s1334_s2 + $0x28] sm:$0xff]  ;;  %s928_s27 = sshll.u32 %s1017_s18, 4  ;;  %s929_s27 = int_to_ptr.vmem [resolvable:$false] %s928_s27 }
  0x59   : > { %p926_p12 = pnand %p925_p0, %p1349_p3  ;;  %s930_s6 = scalar_lea.vmem %s929_s27, 512 }
  0x5a   : > { %303 = vperm.xlu0 %862, %v289_v6   ;;  %762 = vmatmul.mubr.msk.f32.vlgmr.msra.gmra.mrb[0].mxu0 %vm306_vm0, %v281_v7  ;;  %p931_p7 = scmp.lt.s32.totalorder %s1278_s8, %s929_s27  ;;  %p932_p10 = scmp.lt.s32.totalorder %s930_s6, %s924_s10 }
  0x5b   : > { %399 = vperm.xlu1 %863, %v728_v11   ;;  %775 = vmatprep.mubr.msk.f32.mxu0 %vm306_vm0, %v725_v27  ;;  %p927_p13 = pneg %p926_p12 }
  0x5c   : > { %p933_p9 = por %p932_p10, %p931_p7 }
  0x5e   : > { %489 = vperm.xlu0 %862, %v729_v8   ;;  %p934_p11 = pnand %p933_p9, %p927_p13 }
  0x5f   : > { %494 = vperm.xlu1 %863, %v730_v12  }
  0xd5   : > { %v299_v13 = vpop.permute.xlu0 %298 }
  0xd6   : > { %v395_v28 = vpop.permute.xlu1 %394 }
  0xd9   : > { %v304_v14 = vpop.permute.xlu0 %303 }
  0xda   : > { %v400_v29 = vpop.permute.xlu1 %399 }
  0xdd   : > { %v490_v42 = vpop.permute.xlu0 %489 }
  0xde   : > { %v495_v40 = vpop.permute.xlu1 %494 }
 0x12d   : > { %v763_v16 = vpop.f32.mrb[0].mxu0 }
 0x12e   : > { %v385_v17 = vadd.f32 %v763_v16, %v304_v14  ;;  %v379_v19 = vpop.f32.mrb[1].mxu0 }
 0x12f   : > { %v380_v20 = vadd.f32 %v379_v19, %v299_v13 }
 0x130   : > { %v389_v21 = vadd.f32 %v385_v17, %v279_v15 }
 0x131   : > { %v388_v22 = vadd.f32 %v380_v20, %v278_v18 }
 0x132   : > { %v391_v23 = vmax.f32 %v389_v21, 0.0 }
 0x133   : > { %v390_v24 = vmax.f32 %v388_v22, 0.0 }
 0x135   : > { %v782_v25 = vpack.c.bf16 %v391_v23, %v390_v24 }
 0x137   : > { %783 = vmatprep.subr.bf16.mxu1 %v782_v25 }
 0x138   : > { %785 = vmatpush3.bf16.msra.mxu1 %v782_v25 }
 0x13b   : > { %769 = vmatmul.mubr.msk.f32.vlgmr.msra.gmra.mrb[0].mxu1 %vm306_vm0, %v724_v26 }
 0x20e   : > { %v770_v30 = vpop.f32.mrb[0].mxu1 }
 0x20f   : > { %v480_v31 = vadd.f32 %v770_v30, %v400_v29  ;;  %v474_v32 = vpop.f32.mrb[1].mxu1 }
 0x210   : > { %v475_v33 = vadd.f32 %v474_v32, %v395_v28 }
 0x211   : > { %v484_v34 = vadd.f32 %v480_v31, %v279_v15 }
 0x212   : > { %v483_v35 = vadd.f32 %v475_v33, %v278_v18 }
 0x213   : > { %v486_v36 = vmax.f32 %v484_v34, 0.0 }
 0x214   : > { %v485_v37 = vmax.f32 %v483_v35, 0.0 }
 0x216   : > { %v786_v38 = vpack.c.bf16 %v486_v36, %v485_v37 }
 0x218   : > { %787 = vmatprep.subr.bf16.mxu0 %v786_v38 }
 0x219   : > { %789 = vmatpush3.bf16.msra.mxu0 %v786_v38 }
 0x21c   : > { %776 = vmatmul.mubr.msk.f32.vlgmr.msra.gmra.mrb[2].mxu0 %vm306_vm0, %v726_v39 }
 0x2ef   : > { %v777_v41 = vpop.f32.mrb[2].mxu0 }
 0x2f0   : > { %v575_v43 = vadd.f32 %v777_v41, %v495_v40  ;;  %v569_v44 = vpop.f32.mrb[3].mxu0 }
 0x2f1   : > { %v570_v45 = vadd.f32 %v569_v44, %v490_v42 }
 0x2f2   : > { %v579_v46 = vadd.f32 %v575_v43, %v575_v43 }
 0x2f3   : > { %v578_v47 = vadd.f32 %v570_v45, %v570_v45 }
 0x2f4   : > { %v581_v48 = vmax.f32 %v579_v46, 0.0 }
 0x2f5   : > { %v580_v49 = vmax.f32 %v578_v47, 0.0 }
 0x2f6   : > { %583 = vst [vmem:[%s275_s13 + $0x8] sm:$0xff] %v581_v48 }
 0x2f7   : > { %582 = vst [vmem:[%s275_s13] sm:$0xff] %v580_v49 }
 0x2f8   : > { %937 = shalt.err (!%p934_p11)
}
 0x2f9   : > { %s938_s22 = scalar_lea.hbm %s1283_s24, 256  ;;  %s942_s25 = scalar_lea.hbm %s1336_s4, 512 }
 0x2fa   : > { %p939_p1 = scmp.ne.s32.totalorder %s1283_s24, %s938_s22  ;;  %p943_p5 = scmp.lt.u32.totalorder %s1283_s24, %s1336_s4 }
 0x2fb   : > { %p944_p4 = scmp.lt.u32.totalorder %s942_s25, %s938_s22  ;;  %p946_p0 = scmp.lt.u32.totalorder %s938_s22, %s1283_s24 }
 0x2fc   : > { %p940_p6 = pnand %p939_p1, %p1349_p3 }
 0x2fd   : > { %p945_p8 = por %p944_p4, %p943_p5 }
 0x2fe   : > { %p941_p2 = pneg %p940_p6 }
 0x2ff   : > { %p947_p12 = por %p946_p0, %p945_p8 }
 0x301   : > { %p948_p13 = pnand %p947_p12, %p941_p2 }
 0x303   : > { %951 = shalt.err (!%p948_p13)
}
 0x304   : > { %s1018_s5 = smov 128   ;;  %s1019_s9 = smov 8  }
 0x305   : > { %794 = dma.vmem_to_hbm [thread:$0]  (%p1349_p3), %s1278_s8, 256, %s1283_s24, %s585_s26, %s1018_s5, %s1018_s5, %s1019_s9  }
 0x306 PF: > { %s614_s11 = sand.u32 1, %s990_s15   ;;  %p1350_p7 = scmp.ne.s32.totalorder %s1343_s30, 0 }
 0x307   : > { %p1351_p10 = scmp.ge.s32.totalorder %s1010_s20, 2  ;;  %s615_s10 = scalar_lea.sflag [#allocation4], %s614_s11 }
 0x309   : > { %p804_p9 = pnand %p1351_p10, %p1350_p7 }
 0x30b   : > { %985 = dma.done.wait (!%p804_p9), %s615_s10, 256  }
 0x30c   : > { %987 = vsyncadd (!%p804_p9), %s615_s10, 4294967040  ;;  %s23_s20 = sadd.s32 1, %s1010_s20   ;;  %s1352_s15 = smov %s994_s16 }
 0x30d   : > { %p20_p11 = scmp.ge.s32.totalorder %s23_s20, 4   ;;  %s1353_s16 = smov %s998_s17 }
 0x30e   : > { %s1354_s17 = smov %s1101_s29  ;;  %s1355_s18 = smov %s1006_s19 }
 0x30f   : > { %s1356_s19 = smov %s1358_s23  ;;  %22 = sbr.rel (!%p20_p11) target bundleno = 8 (0x8), region = 98 }
 0x316   :  { %620 = vsyncpa [#allocation3], 1 }
 0x317   :  { %622 = vsyncpa [#allocation3 + $0x1], 1 }
 0x318   :  { %623 = vsyncpa [#allocation6], 1 }
 0x319   :  { %625 = vsyncpa [#allocation6 + $0x1], 1 }
 0x31a   :  { %626 = vsyncpa [#allocation4], 1 }
 0x31b   :  { %628 = vsyncpa [#allocation4 + $0x1], 1 }

</bundles_post_ra>
